<compile_context>
chip_gen: v7x
topology: tpu7x:2x2x1
jax: 0.10.0
libtpu: 0.0.40
codegen_flags: <defaults>
</compile_context>

<pallas_src>
import functools

import jax
import jax.numpy as jnp
from jax.experimental import pallas as pl
from jax.experimental.pallas import tpu as pltpu


# Conservative VMEM budget for the double-buffered input block + f32
# temporaries: fits every generation's default scoped VMEM without having to
# raise vmem_limit_bytes.
_VMEM_BUDGET_BYTES = 12 * 1024 * 1024


def _sublane_quantum(dtype):
    """Dtype-aware sublane quantum: 8 for 32-bit, 16 for bf16, 32 for 8-bit."""
    return max(8, 32 // jnp.dtype(dtype).itemsize)


def _choose_row_tile(mf, q, max_tm=256):
    """Row (M*F) tile: a multiple of the sublane quantum that divides MF and
    prefers >=2 row blocks (so the 'parallel' grid axis shards across both
    TensorCores on v7x).  Falls back to the full extent (always legal)."""
    if mf % q != 0 or mf <= q:
        return mf
    cand = None
    for t in range(q, mf // 2 + 1, q):
        if mf % t == 0 and t <= max_tm:
            cand = t
    return cand if cand is not None else mf


def _choose_lane_tile(chw, max_th):
    """Lane (c*H*W) tile.  Prefer the full extent (one contiguous DMA per
    (g, row) slab, reduction grid of 1).  Otherwise the largest 128-aligned
    divisor that fits the budget; if none exists, tile at a fixed 128-aligned
    width and zero-pad the tail (masked in-kernel).  Returns (th, padded_chw).
    """
    if chw <= max_th:
        return chw, chw                      # full extent, no padding
    t = (max_th // 128) * 128
    tt = t
    while tt >= 128:
        if chw % tt == 0:
            return tt, chw                   # aligned divisor
        tt -= 128
    n_chunks = -(-chw // t)                  # ceil-div: ragged tail, pad it
    return t, n_chunks * t


def _mbstd_stats_kernel(xg_ref, y_ref, *, G, inv_g, inv_chw, th, valid_cols):
    # xg_ref: (G, tm, th) block of the grouped input (input dtype).
    # y_ref : (tm, 1) f32; same output block for every lane chunk j, so it
    #         stays VMEM-resident across the reduction axis.
    j = pl.program_id(1)

    @pl.when(j == 0)
    def _init():
        y_ref[...] = jnp.zeros_like(y_ref)

    # Pass 1: group mean.  Accumulate per-g (tm, th) f32 slices instead of
    # materializing a (G, tm, th) f32 temporary.
    s1 = xg_ref[0].astype(jnp.float32)
    for g in range(1, G):
        s1 = s1 + xg_ref[g].astype(jnp.float32)
    mu = s1 * inv_g

    # Pass 2: centered sum of squares (two-pass variance; matches the PyTorch
    # reference numerics -- no E[x^2]-mu^2 cancellation or clamp).
    d = xg_ref[0].astype(jnp.float32) - mu
    ss = d * d
    for g in range(1, G):
        d = xg_ref[g].astype(jnp.float32) - mu
        ss = ss + d * d

    std = jnp.sqrt(ss * inv_g + 1e-8)                      # (tm, th)

    if valid_cols is not None:
        # Ragged tail chunk: zero out padded columns before accumulating.
        col = j * th + jax.lax.broadcasted_iota(jnp.int32, std.shape, 1)
        std = jnp.where(col < valid_cols, std, 0.0)

    # Partial spatial/channel-group sum for this lane chunk.
    y_ref[...] += jnp.sum(std, axis=-1, keepdims=True)

    @pl.when(j == pl.num_programs(1) - 1)
    def _finalize():
        y_ref[...] = y_ref[...] * inv_chw                  # divide by c*H*W


def minibatch_std_layer(x, group_size, num_channels=1, *,
                        vmem_budget_bytes=_VMEM_BUDGET_BYTES):
    """Pallas implementation of MinibatchStdLayer.forward.  x: (N, C, H, W)."""
    N, C, H, W = x.shape
    G = min(group_size, N) if group_size is not None else N
    F = num_channels
    assert N % G == 0, (N, G)
    assert C % F == 0, (C, F)
    c = C // F
    M = N // G
    MF = M * F
    cHW = c * H * W

    # Zero-copy grouped view: (G, M, F, c, H, W) with (M,F) and (c,H,W) merged.
    xg = x.reshape(G, MF, cHW)

    isz = jnp.dtype(x.dtype).itemsize
    q = _sublane_quantum(x.dtype)
    tm = _choose_row_tile(MF, q)

    # VMEM budget: double-buffered (G, tm, th) input block + ~4 f32 (tm, th)
    # temporaries must stay under `vmem_budget_bytes`.
    elems_cap = max(1, vmem_budget_bytes // (2 * G * isz + 4 * 4))
    max_th = max(128, (elems_cap // tm // 128) * 128)
    th, chw_padded = _choose_lane_tile(cHW, max_th)

    pad = chw_padded - cHW
    if pad > 0:
        # Rare fallback (large, non-128-divisible c*H*W): pad the lane axis
        # and mask the tail in-kernel.
        xg = jnp.pad(xg, ((0, 0), (0, 0), (0, pad)))

    grid = (MF // tm, chw_padded // th)                    # (parallel, reduction)

    kernel = functools.partial(
        _mbstd_stats_kernel, G=G, inv_g=1.0 / G, inv_chw=1.0 / cHW,
        th=th, valid_cols=(cHW if pad > 0 else None))

    y = pl.pallas_call(
        kernel,
        out_shape=jax.ShapeDtypeStruct((MF, 1), jnp.float32),
        grid=grid,
        in_specs=[pl.BlockSpec((G, tm, th), lambda i, j: (0, i, j))],
        out_specs=pl.BlockSpec((tm, 1), lambda i, j: (i, 0)),
        compiler_params=pltpu.CompilerParams(
            dimension_semantics=("parallel", "arbitrary")),
    )(xg)

    # Bulk broadcast + concat are pure HBM copies: let XLA do them at roofline.
    # Cast the tiny (M, F) stats first so no f32 (G, M, F, H, W) intermediate
    # can materialize.
    y = y.reshape(M, F).astype(x.dtype)
    y_full = jnp.broadcast_to(y[None, :, :, None, None], (G, M, F, H, W))
    y_full = y_full.reshape(N, F, H, W)
    # TODO(synk): the concat re-reads/re-writes all of x (~2*|x| HBM); fuse it
    # into the consumer or a donated (N, C+F, H, W) buffer when possible.
    return jnp.concatenate([x, y_full], axis=1)


def _reference_mbstd(x, group_size, num_channels=1):
    """Pure-JAX transcription of the PyTorch forward for validation."""
    N, C, H, W = x.shape
    G = min(group_size, N) if group_size is not None else N
    F = num_channels
    c = C // F
    y = x.reshape(G, -1, F, c, H, W)
    y = y - y.mean(axis=0)
    y = jnp.square(y).mean(axis=0)
    y = jnp.sqrt(y + 1e-8)
    y = y.mean(axis=(2, 3, 4))
    y = y.reshape(-1, F, 1, 1)
    y = jnp.tile(y, (G, 1, H, W))
    return jnp.concatenate([x, y], axis=1)


def _check(x, group_size, num_channels, **kw):
    out = jax.block_until_ready(
        minibatch_std_layer(x, group_size, num_channels, **kw))
    ref = _reference_mbstd(x, group_size, num_channels)
    N, C, H, W = x.shape
    assert out.shape == (N, C + num_channels, H, W), out.shape
    err = float(jnp.max(jnp.abs(out - ref)))
    assert jnp.allclose(out, ref, atol=1e-5, rtol=1e-5), err


if __name__ == "__main__":
    key = jax.random.PRNGKey(0)
    k1, k2, k3, k4 = jax.random.split(key, 4)

    # Primary small case: N=8, C=4, H=W=16, group_size=4, num_channels=2
    #  -> G=4, M=2, F=2, c=2, cHW=512, grid=(1,1), full-extent block.
    x1 = jax.random.normal(k1, (8, 4, 16, 16), dtype=jnp.float32)
    _check(x1, group_size=4, num_channels=2)

    # Non-128 / non-8 full-extent block path (cHW=108, MF=2).
    x2 = jax.random.normal(k2, (4, 3, 6, 6), dtype=jnp.float32)
    _check(x2, group_size=2, num_channels=1)

    # Row-split parallel axis (MF=16 -> tm=8, 2 row blocks).
    x3 = jax.random.normal(k3, (32, 4, 8, 8), dtype=jnp.float32)
    _check(x3, group_size=2, num_channels=1)

    # Forced multi-chunk reduction + ragged-tail masking (tiny VMEM budget).
    x4 = jax.random.normal(k4, (4, 4, 20, 20), dtype=jnp.float32)
    _check(x4, group_size=2, num_channels=1, vmem_budget_bytes=16384)

    print("KERNEL_OK")
</pallas_src>

<mosaic_0001>
module attributes {stable_mosaic.version = 11 : i64} {
  func.func @_mbstd_stats_kernel(%arg0: i32, %arg1: i32, %arg2: memref<4x4x512xf32, #tpu.memory_space<vmem>>, %arg3: memref<4x1xf32, #tpu.memory_space<vmem>>) attributes {dimension_semantics = [#tpu.dimension_semantics<parallel>, #tpu.dimension_semantics<arbitrary>], iteration_bounds = array<i64: 1, 1>, scalar_prefetch = 0 : i64, scratch_operands = 0 : i64, tpu.core_type = #tpu.core_type<tc>, window_params = [{transform_indices = @transform_0, window_bounds = array<i64: 4, 4, 512>}, {transform_indices = @transform_1, window_bounds = array<i64: 4, 1>}]} {
    %c0_i32 = arith.constant 0 : i32
    %0 = arith.cmpi eq, %arg1, %c0_i32 : i32
    %1 = arith.extui %0 : i1 to i32
    %c0_i32_0 = arith.constant 0 : i32
    %2 = arith.cmpi ne, %1, %c0_i32_0 : i32
    scf.if %2 {
      %cst_30 = arith.constant 0.000000e+00 : f32
      %48 = vector.broadcast %cst_30 : f32 to vector<4x1xf32>
      %c0_31 = arith.constant 0 : index
      %c0_32 = arith.constant 0 : index
      %49 = vector.load %arg3[%c0_31, %c0_32] : memref<4x1xf32, #tpu.memory_space<vmem>>, vector<4x1xf32>
      tpu.vector_store %arg3[%c0_31, %c0_32], %48 {strides = array<i32>} : memref<4x1xf32, #tpu.memory_space<vmem>>, vector<4x1xf32>,
    } else {
    }
    %c0 = arith.constant 0 : index
    %c0_1 = arith.constant 0 : index
    %c0_2 = arith.constant 0 : index
    %3 = vector.load %arg2[%c0, %c0_1, %c0_2] : memref<4x4x512xf32, #tpu.memory_space<vmem>>, vector<1x4x512xf32>
    %4 = vector.shape_cast %3 : vector<1x4x512xf32> to vector<4x512xf32>
    %c1 = arith.constant 1 : index
    %c0_3 = arith.constant 0 : index
    %c0_4 = arith.constant 0 : index
    %5 = vector.load %arg2[%c1, %c0_3, %c0_4] : memref<4x4x512xf32, #tpu.memory_space<vmem>>, vector<1x4x512xf32>
    %6 = vector.shape_cast %5 : vector<1x4x512xf32> to vector<4x512xf32>
    %7 = arith.addf %4, %6 : vector<4x512xf32>
    %c2 = arith.constant 2 : index
    %c0_5 = arith.constant 0 : index
    %c0_6 = arith.constant 0 : index
    %8 = vector.load %arg2[%c2, %c0_5, %c0_6] : memref<4x4x512xf32, #tpu.memory_space<vmem>>, vector<1x4x512xf32>
    %9 = vector.shape_cast %8 : vector<1x4x512xf32> to vector<4x512xf32>
    %10 = arith.addf %7, %9 : vector<4x512xf32>
    %c3 = arith.constant 3 : index
    %c0_7 = arith.constant 0 : index
    %c0_8 = arith.constant 0 : index
    %11 = vector.load %arg2[%c3, %c0_7, %c0_8] : memref<4x4x512xf32, #tpu.memory_space<vmem>>, vector<1x4x512xf32>
    %12 = vector.shape_cast %11 : vector<1x4x512xf32> to vector<4x512xf32>
    %13 = arith.addf %10, %12 : vector<4x512xf32>
    %cst = arith.constant 2.500000e-01 : f32
    %14 = vector.broadcast %cst : f32 to vector<4x512xf32>
    %15 = arith.mulf %13, %14 : vector<4x512xf32>
    %c0_9 = arith.constant 0 : index
    %c0_10 = arith.constant 0 : index
    %c0_11 = arith.constant 0 : index
    %16 = vector.load %arg2[%c0_9, %c0_10, %c0_11] : memref<4x4x512xf32, #tpu.memory_space<vmem>>, vector<1x4x512xf32>
    %17 = vector.shape_cast %16 : vector<1x4x512xf32> to vector<4x512xf32>
    %18 = arith.subf %17, %15 : vector<4x512xf32>
    %19 = arith.mulf %18, %18 : vector<4x512xf32>
    %c1_12 = arith.constant 1 : index
    %c0_13 = arith.constant 0 : index
    %c0_14 = arith.constant 0 : index
    %20 = vector.load %arg2[%c1_12, %c0_13, %c0_14] : memref<4x4x512xf32, #tpu.memory_space<vmem>>, vector<1x4x512xf32>
    %21 = vector.shape_cast %20 : vector<1x4x512xf32> to vector<4x512xf32>
    %22 = arith.subf %21, %15 : vector<4x512xf32>
    %23 = arith.mulf %22, %22 : vector<4x512xf32>
    %24 = arith.addf %19, %23 : vector<4x512xf32>
    %c2_15 = arith.constant 2 : index
    %c0_16 = arith.constant 0 : index
    %c0_17 = arith.constant 0 : index
    %25 = vector.load %arg2[%c2_15, %c0_16, %c0_17] : memref<4x4x512xf32, #tpu.memory_space<vmem>>, vector<1x4x512xf32>
    %26 = vector.shape_cast %25 : vector<1x4x512xf32> to vector<4x512xf32>
    %27 = arith.subf %26, %15 : vector<4x512xf32>
    %28 = arith.mulf %27, %27 : vector<4x512xf32>
    %29 = arith.addf %24, %28 : vector<4x512xf32>
    %c3_18 = arith.constant 3 : index
    %c0_19 = arith.constant 0 : index
    %c0_20 = arith.constant 0 : index
    %30 = vector.load %arg2[%c3_18, %c0_19, %c0_20] : memref<4x4x512xf32, #tpu.memory_space<vmem>>, vector<1x4x512xf32>
    %31 = vector.shape_cast %30 : vector<1x4x512xf32> to vector<4x512xf32>
    %32 = arith.subf %31, %15 : vector<4x512xf32>
    %33 = arith.mulf %32, %32 : vector<4x512xf32>
    %34 = arith.addf %29, %33 : vector<4x512xf32>
    %cst_21 = arith.constant 2.500000e-01 : f32
    %35 = vector.broadcast %cst_21 : f32 to vector<4x512xf32>
    %36 = arith.mulf %34, %35 : vector<4x512xf32>
    %cst_22 = arith.constant 9.99999993E-9 : f32
    %37 = vector.broadcast %cst_22 : f32 to vector<4x512xf32>
    %38 = arith.addf %36, %37 : vector<4x512xf32>
    %39 = math.sqrt %38 : vector<4x512xf32>
    %c0_23 = arith.constant 0 : index
    %c0_24 = arith.constant 0 : index
    %40 = vector.load %arg3[%c0_23, %c0_24] : memref<4x1xf32, #tpu.memory_space<vmem>>, vector<4x1xf32>
    %cst_25 = arith.constant dense<0.000000e+00> : vector<4xf32>
    %41 = vector.multi_reduction <add>, %39, %cst_25 [1] : vector<4x512xf32> to vector<4xf32>
    %42 = vector.shape_cast %41 : vector<4xf32> to vector<4x1xf32>
    %43 = arith.addf %40, %42 : vector<4x1xf32>
    %c0_26 = arith.constant 0 : index
    %c0_27 = arith.constant 0 : index
    %44 = vector.load %arg3[%c0_26, %c0_27] : memref<4x1xf32, #tpu.memory_space<vmem>>, vector<4x1xf32>
    tpu.vector_store %arg3[%c0_26, %c0_27], %43 {strides = array<i32>} : memref<4x1xf32, #tpu.memory_space<vmem>>, vector<4x1xf32>,
    %c0_i32_28 = arith.constant 0 : i32
    %45 = arith.cmpi eq, %arg1, %c0_i32_28 : i32
    %46 = arith.extui %45 : i1 to i32
    %c0_i32_29 = arith.constant 0 : i32
    %47 = arith.cmpi ne, %46, %c0_i32_29 : i32
    scf.if %47 {
      %c0_30 = arith.constant 0 : index
      %c0_31 = arith.constant 0 : index
      %48 = vector.load %arg3[%c0_30, %c0_31] : memref<4x1xf32, #tpu.memory_space<vmem>>, vector<4x1xf32>
      %cst_32 = arith.constant 0.001953125 : f32
      %49 = vector.broadcast %cst_32 : f32 to vector<4x1xf32>
      %50 = arith.mulf %48, %49 : vector<4x1xf32>
      %c0_33 = arith.constant 0 : index
      %c0_34 = arith.constant 0 : index
      %51 = vector.load %arg3[%c0_33, %c0_34] : memref<4x1xf32, #tpu.memory_space<vmem>>, vector<4x1xf32>
      tpu.vector_store %arg3[%c0_33, %c0_34], %50 {strides = array<i32>} : memref<4x1xf32, #tpu.memory_space<vmem>>, vector<4x1xf32>,
    } else {
    }
    return
  }
  func.func @transform_0(%arg0: i32, %arg1: i32) -> (i32, i32, i32) {
    %c0_i32 = arith.constant 0 : i32
    %c0_i32_0 = arith.constant 0 : i32
    return %c0_i32, %arg0, %arg1 : i32, i32, i32
  }
  func.func @transform_1(%arg0: i32, %arg1: i32) -> (i32, i32) {
    %c0_i32 = arith.constant 0 : i32
    %c0_i32_0 = arith.constant 0 : i32
    return %arg0, %c0_i32 : i32, i32
  }
}

</mosaic_0001>

<bundles_post_ra>
// kernel: tpu_custom_call.1
= control target key start
LH: loop header
LB: loop body
LE: loop exit
PB: predicated region body
PF: predicated region fallthrough
CT: control target
= control target key end

     0   :  { %6 = vsyncpa [#allocation3], 0  ;;  %s150_s6 = smov [#allocation2]   ;;  %s194_s0 = inlined_call_operand.hbm [shape: f32[4,4,512], index: 0, kind: input, shape index: {}]   ;;  %s195_s1 = inlined_call_operand.vmem [shape: f32[4,1], index: 1, kind: output, shape index: {}]  }
   0x1   :  { %s12_s7 = sshll.u32 %s150_s6, 4  ;;  %s126_s10 = scalar_lea.hbm %s194_s0, 1024  ;;  %s13_s7 = int_to_ptr.vmem [resolvable:$true] %s12_s7 }
   0x2   :  { %p127_p0 = scmp.ne.s32.totalorder %s194_s0, %s126_s10  ;;  %p130_p1 = scmp.lt.u32.totalorder %s126_s10, %s194_s0 }
   0x4   :  { %p132_p2 = pnand %p130_p1, %p127_p0 }
   0x6   :  { %135 = shalt.err (!%p132_p2)
}
   0x7   :  { %s136_s15 = scalar_lea.vmem %s13_s7, 1024  ;;  %p141_p4 = scmp.lt.s32.totalorder %s13_s7, %s13_s7 }
   0x8   :  { %p137_p3 = scmp.ne.s32.totalorder %s13_s7, %s136_s15  ;;  %p142_p5 = scmp.lt.s32.totalorder %s136_s15, %s136_s15 }
   0xa   :  { %p143_p6 = por %p142_p5, %p141_p4 }
   0xc   :  { %p144_p7 = pnand %p143_p6, %p137_p3 }
   0xe   :  { %147 = shalt.err (!%p144_p7)
}
   0xf   :  { %s151_s16 = smov 256   ;;  %s152_s17 = smov 16  }
  0x10   :  { %18 = dma.hbm_to_vmem [thread:$0]  %s194_s0, 1024, %s13_s7, [#allocation3], %s151_s16, %s151_s16, %s152_s17  }
  0x11   :  { %148 = dma.done.wait [#allocation3], 1024  }
  0x12   :  { %149 = vsyncadd [#allocation3], 4294966272  ;;  %vm26_vm0 = vcmask 3072   ;;  %v153_v0 = vmov 0.0   ;;  %v28_v1 = vld [vmem:[#allocation2] sm:$0xff]  ;;  %v29_v2 = vld [vmem:[#allocation2 + $0x8] sm:$0xff] }
  0x13   :  { %27 = vst.msk [vmem:[%s195_s1] sm:$0xf] %vm26_vm0, %v153_v0  ;;  %v31_v3 = vld [vmem:[#allocation2 + $0x10] sm:$0xff]  ;;  %v32_v4 = vld [vmem:[#allocation2 + $0x18] sm:$0xff]  ;;  %v36_v6 = vld [vmem:[#allocation2 + $0x20] sm:$0xff]  ;;  %vm94_vm5 = vcmask 1043456  }
  0x14   :  { %v33_v5 = vadd.f32 %v31_v3, %v28_v1  ;;  %v37_v7 = vld [vmem:[#allocation2 + $0x28] sm:$0xff]  ;;  %v34_v8 = vadd.f32 %v32_v4, %v29_v2  ;;  %v41_v9 = vld [vmem:[#allocation2 + $0x30] sm:$0xff]  ;;  %v42_v11 = vld [vmem:[#allocation2 + $0x38] sm:$0xff] }
  0x16   :  { %v38_v10 = vadd.f32 %v36_v6, %v33_v5  ;;  %v39_v12 = vadd.f32 %v37_v7, %v34_v8 }
  0x18   :  { %v43_v13 = vadd.f32 %v41_v9, %v38_v10  ;;  %v44_v14 = vadd.f32 %v42_v11, %v39_v12 }
  0x1a   :  { %v45_v15 = vmul.f32 0.25, %v43_v13  ;;  %v46_v16 = vmul.f32 0.25, %v44_v14  ;;  %v87_v62 = vld [vmem:[%s195_s1] sm:$0xf] }
  0x1c   :  { %v47_v17 = vsub.f32 %v28_v1, %v45_v15  ;;  %v51_v18 = vsub.f32 %v31_v3, %v45_v15  ;;  %v57_v19 = vsub.f32 %v36_v6, %v45_v15  ;;  %v63_v20 = vsub.f32 %v41_v9, %v45_v15 }
  0x1d   :  { %v48_v21 = vsub.f32 %v29_v2, %v46_v16  ;;  %v52_v22 = vsub.f32 %v32_v4, %v46_v16  ;;  %v58_v23 = vsub.f32 %v37_v7, %v46_v16  ;;  %v64_v24 = vsub.f32 %v42_v11, %v46_v16 }
  0x1e   :  { %v49_v25 = vmul.f32 %v47_v17, %v47_v17  ;;  %v53_v26 = vmul.f32 %v51_v18, %v51_v18  ;;  %v59_v27 = vmul.f32 %v57_v19, %v57_v19  ;;  %v65_v32 = vmul.f32 %v63_v20, %v63_v20 }
  0x1f   :  { %v50_v28 = vmul.f32 %v48_v21, %v48_v21  ;;  %v54_v29 = vmul.f32 %v52_v22, %v52_v22  ;;  %v60_v30 = vmul.f32 %v58_v23, %v58_v23  ;;  %v66_v34 = vmul.f32 %v64_v24, %v64_v24 }
  0x20   :  { %v55_v31 = vadd.f32 %v53_v26, %v49_v25 }
  0x21   :  { %v56_v33 = vadd.f32 %v54_v29, %v50_v28 }
  0x22   :  { %v61_v35 = vadd.f32 %v59_v27, %v55_v31 }
  0x23   :  { %v62_v36 = vadd.f32 %v60_v30, %v56_v33 }
  0x24   :  { %v67_v37 = vadd.f32 %v65_v32, %v61_v35 }
  0x25   :  { %v68_v38 = vadd.f32 %v66_v34, %v62_v36 }
  0x26   :  { %v69_v39 = vmul.f32 0.25, %v67_v37 }
  0x27   :  { %v70_v40 = vmul.f32 0.25, %v68_v38 }
  0x28   :  { %v71_v41 = vadd.f32 1e-08, %v69_v39 }
  0x29   :  { %v72_v42 = vadd.f32 1e-08, %v70_v40 }
  0x2a   :  { %122 = vrsqrt.f32 %v71_v41  ;;  %vm75_vm1 = vcmp.eq.f32.partialorder %v71_v41, inf  ;;  %v78_v44 = vand.u32 2147483648, %v71_v41  ;;  %vm77_vm2 = vcmp.eq.f32.partialorder %v71_v41, 0.0 }
  0x2b   :  { %124 = vrsqrt.f32 %v72_v42  ;;  %vm82_vm3 = vcmp.eq.f32.partialorder %v72_v42, inf  ;;  %v85_v47 = vand.u32 2147483648, %v72_v42  ;;  %vm84_vm4 = vcmp.eq.f32.partialorder %v72_v42, 0.0 }
  0x34   :  { %v123_v43 = vpop.eup %122 }
  0x35   :  { %v125_v45 = vpop.eup %124  ;;  %v74_v46 = vmul.f32 %v123_v43, %v71_v41 }
  0x36   :  { %v81_v48 = vmul.f32 %v125_v45, %v72_v42 }
  0x37   :  { %v76_v49 = vsel %vm75_vm1, %v71_v41, %v74_v46 }
  0x38   :  { %v79_v50 = vsel %vm77_vm2, %v78_v44, %v76_v49  ;;  %v83_v51 = vsel %vm82_vm3, %v72_v42, %v81_v48 }
  0x39   :  { %v86_v52 = vsel %vm84_vm4, %v85_v47, %v83_v51  ;;  %v90_v53 = vcombine.high %v79_v50, %v79_v50  ;;  %v95_v54 = vsel %vm94_vm5, %v79_v50, 0.0 }
  0x3a   :  { %v91_v55 = vcombine.high %v86_v52, %v86_v52  ;;  %v98_v57 = vsel %vm94_vm5, %v86_v52, 0.0 }
  0x3b   :  { %v96_v56 = vsel %vm94_vm5, %v90_v53, 0.0 }
  0x3c   :  { %v97_v58 = vadd.f32 %v96_v56, %v95_v54  ;;  %v100_v59 = vsel %vm94_vm5, %v91_v55, 0.0 }
  0x3e   :  { %v99_v60 = vadd.f32 %v98_v57, %v97_v58 }
  0x40   :  { %v101_v61 = vadd.f32 %v100_v59, %v99_v60 }
  0x42   :  { %102 = vadd.xlane.f32.xlu0 %v101_v61 }
  0xcf   :  { %v103_v63 = vpop.xlane.xlu0 %102 }
  0xd0   :  { %v104_v0 = vadd.f32 %v103_v63, %v87_v62 }
  0xd2   :  { %106 = vst.msk [vmem:[%s195_s1] sm:$0xf] %vm26_vm0, %v104_v0 }
  0xd9   :  { %v110_v1 = vld [vmem:[%s195_s1] sm:$0xf] }
  0xda   :  { %v111_v2 = vmul.f32 0.001953125, %v110_v1 }
  0xdc   :  { %112 = vst.msk [vmem:[%s195_s1] sm:$0xf] %vm26_vm0, %v111_v2 }
  0xdd   :  { %117 = vsyncpa [#allocation3], 1 }

</bundles_post_ra>
